<compile_context>
chip_gen: v5e
topology: v5e:2x2
jax: 0.10.0
libtpu: 0.0.40
codegen_flags: <defaults>
</compile_context>

<pallas_src>
import math
from functools import partial

import jax
import jax.numpy as jnp
from jax.experimental import pallas as pl
from jax.experimental.pallas import tpu as pltpu


# ------------------------------ kernels ------------------------------------


def _bcast_pe(pe, x_shape):
    """Broadcast a (tS, D) pe tile to the x block shape (trace-time branch)."""
    if len(x_shape) == 3:                      # (tS, B, D): sublane broadcast
        return pe[:, None, :]
    reps = x_shape[-1] // pe.shape[-1]         # (tS, B*D): tile across lanes
    if reps == 1:
        return pe
    return jnp.tile(pe, (1, reps))


def _pe_add_kernel(x_ref, pe_ref, o_ref):
    # Eval mode / p == 0.
    o_ref[...] = (x_ref[...] + _bcast_pe(pe_ref[...], x_ref.shape)).astype(o_ref.dtype)


def _pe_add_dropout_prng_kernel(seed_ref, x_ref, pe_ref, o_ref, *, threshold, scale):
    # TPU path: dropout mask drawn from the hardware PRNG (no extra HBM read).
    # Reseed per seq tile so every tile has its own stream.
    pltpu.prng_seed(seed_ref[0], pl.program_id(0))
    y = x_ref[...] + _bcast_pe(pe_ref[...], x_ref.shape)
    bits = pltpu.prng_random_bits(y.shape)
    if bits.dtype != jnp.uint32:               # some JAX versions return int32 raw bits
        bits = pltpu.bitcast(bits, jnp.uint32)
    keep = bits >= jnp.uint32(threshold)
    o_ref[...] = jnp.where(keep, y * scale, 0.0).astype(o_ref.dtype)


def _pe_add_dropout_bits_kernel(x_ref, pe_ref, bits_ref, o_ref, *, threshold, scale):
    # Portable path: uint8 random bits streamed in (1 B/elem of extra traffic).
    y = x_ref[...] + _bcast_pe(pe_ref[...], x_ref.shape)
    keep = bits_ref[...].astype(jnp.uint32) >= jnp.uint32(threshold)
    o_ref[...] = jnp.where(keep, y * scale, 0.0).astype(o_ref.dtype)


# --------------------------- table / tiling setup ---------------------------


def make_positional_table(max_len: int, d_model: int) -> jnp.ndarray:
    """Deterministic sin/cos table (max_len, d_model). Mirrors __init__."""
    position = jnp.arange(max_len, dtype=jnp.float32)[:, None]
    div_term = jnp.exp(
        jnp.arange(0, d_model, 2, dtype=jnp.float32) * (-math.log(10000.0) / d_model)
    )
    pe = jnp.zeros((max_len, d_model), dtype=jnp.float32)
    pe = pe.at[:, 0::2].set(jnp.sin(position * div_term))
    pe = pe.at[:, 1::2].set(jnp.cos(position * div_term))
    return pe


def _vmem_capacity_bytes() -> int:
    try:
        return int(pltpu.get_tpu_info().vmem_capacity_bytes)
    except Exception:
        return 64 * 1024 * 1024               # conservative (v7x per-TC VMEM)


def _choose_seq_tile(seq_len: int, bytes_per_row: int, vmem_limit_bytes: int,
                     min_grid_steps: int = 4) -> int:
    """Largest seq tile whose double-buffered footprint fits the VMEM budget,
    while keeping >= min_grid_steps grid steps (v7x megacore sharding)."""
    tile_budget = vmem_limit_bytes // 2        # headroom for compiler scratch
    rows = tile_budget // max(1, 2 * bytes_per_row)   # 2 = double buffering
    rows = min(rows, max(8, -(-seq_len // min_grid_steps)))
    rows = max(8, rows)
    if rows >= seq_len:
        return seq_len                         # full extent is always legal
    return max(8, (rows // 8) * 8)             # keep sublane dim a multiple of 8


# ------------------------------- wrapper ------------------------------------


def positional_encoding(x, pe_table, *, dropout_p: float = 0.1, training: bool = True,
                        rng_key=None, block_s: int | None = None,
                        use_tpu_prng: bool | None = None, donate_x: bool = False):
    """x: (seq_len, batch, d_model); pe_table: (max_len, d_model)."""
    S, B, D = x.shape
    if pe_table.shape[0] < S or pe_table.shape[1] != D:
        raise ValueError("pe_table is too small for the input")

    # pe[:x.size(0)], cast once in the wrapper so the kernel adds in x's dtype.
    pe_s = pe_table[:S].astype(x.dtype)
    itemsize = x.dtype.itemsize
    sublane_pack = 32 // itemsize              # rows per packed sublane group

    apply_dropout = training and dropout_p > 0.0
    if use_tpu_prng is None:
        use_tpu_prng = jax.default_backend() == "tpu"
    stream_bits = apply_dropout and not use_tpu_prng

    # ---- layout selection: contiguous DMA per seq tile either way ----------
    use_3d = (D % 128 == 0) and (B >= sublane_pack)
    if use_3d:
        x_in = x
        out_shape = jax.ShapeDtypeStruct((S, B, D), x.dtype)
        x_block = (None, B, D)                 # first entry filled with block_s
    else:
        x_in = x.reshape(S, B * D)             # free, layout-preserving
        out_shape = jax.ShapeDtypeStruct((S, B * D), x.dtype)
        x_block = (None, B * D)

    # ---- generation-aware tile / VMEM budget --------------------------------
    bytes_per_row = 2 * B * D * itemsize + D * itemsize   # x + out + pe
    if stream_bits:
        bytes_per_row += B * D                 # uint8 bits
    vmem_limit = min(96 * 1024 * 1024, (_vmem_capacity_bytes() * 3) // 4)

    if block_s is None:
        block_s = _choose_seq_tile(S, bytes_per_row, vmem_limit)
    grid = (pl.cdiv(S, block_s),)

    if use_3d:
        x_spec = pl.BlockSpec((block_s,) + x_block[1:], lambda s, *_: (s, 0, 0))
    else:
        x_spec = pl.BlockSpec((block_s,) + x_block[1:], lambda s, *_: (s, 0))
    pe_spec = pl.BlockSpec((block_s, D), lambda s, *_: (s, 0))
    out_spec = x_spec

    compiler_params = pltpu.CompilerParams(
        dimension_semantics=("parallel",),     # megacore sharding on v7x
        vmem_limit_bytes=int(vmem_limit),
    )

    def _finish(y):
        return y if use_3d else y.reshape(S, B, D)

    # ---- eval / p == 0 -------------------------------------------------------
    if not apply_dropout:
        grid_spec = pltpu.PrefetchScalarGridSpec(
            num_scalar_prefetch=0, grid=grid,
            in_specs=[x_spec, pe_spec], out_specs=out_spec)
        aliases = {0: 0} if donate_x else {}
        y = pl.pallas_call(_pe_add_kernel, out_shape=out_shape, grid_spec=grid_spec,
                           compiler_params=compiler_params,
                           input_output_aliases=aliases)(x_in, pe_s)
        return _finish(y)

    if not (0.0 < dropout_p < 1.0):
        raise ValueError("dropout_p must be in [0, 1) for training mode")
    if rng_key is None:
        raise ValueError("rng_key is required when training with dropout_p > 0")

    scale = 1.0 / (1.0 - dropout_p)

    if use_tpu_prng:
        # keep iff bits >= threshold  =>  P(keep) = 1 - p
        threshold = min(int(round(dropout_p * 2.0 ** 32)), 2 ** 32 - 1)
        seed = jax.random.randint(rng_key, (1,), 0, jnp.iinfo(jnp.int32).max,
                                  dtype=jnp.int32)
        grid_spec = pltpu.PrefetchScalarGridSpec(
            num_scalar_prefetch=1, grid=grid,
            in_specs=[x_spec, pe_spec], out_specs=out_spec)
        aliases = {1: 0} if donate_x else {}   # x shifts by 1 past the scalar seed
        kernel = partial(_pe_add_dropout_prng_kernel,
                         threshold=threshold, scale=scale)
        y = pl.pallas_call(kernel, out_shape=out_shape, grid_spec=grid_spec,
                           compiler_params=compiler_params,
                           input_output_aliases=aliases)(seed, x_in, pe_s)
        return _finish(y)

    # Portable path (CPU / interpret): uint8 bits streamed from HBM.
    # TODO(synk): kept only because pltpu.prng_seed has no non-Mosaic lowering.
    threshold8 = min(int(round(dropout_p * 256.0)), 255)
    bits = jax.random.bits(rng_key, x_in.shape, dtype=jnp.uint8)
    grid_spec = pltpu.PrefetchScalarGridSpec(
        num_scalar_prefetch=0, grid=grid,
        in_specs=[x_spec, pe_spec, x_spec], out_specs=out_spec)
    aliases = {0: 0} if donate_x else {}
    kernel = partial(_pe_add_dropout_bits_kernel,
                     threshold=threshold8, scale=scale)
    y = pl.pallas_call(kernel, out_shape=out_shape, grid_spec=grid_spec,
                       compiler_params=compiler_params,
                       input_output_aliases=aliases)(x_in, pe_s, bits)
    return _finish(y)


# --------------------------------- test -------------------------------------


if __name__ == "__main__":
    key = jax.random.PRNGKey(0)
    k1, k2, k3, k4 = jax.random.split(key, 4)
    dropout_p = 0.1
    max_len = 64

    def check(x, pe_table, drop_key):
        S = x.shape[0]
        ref = x + pe_table[:S].astype(x.dtype)[:, None, :]

        # Eval mode: dropout is identity -> exact check against the reference.
        y_eval = positional_encoding(x, pe_table, dropout_p=dropout_p, training=False)
        assert y_eval.shape == x.shape and y_eval.dtype == x.dtype
        assert jnp.allclose(y_eval, ref, atol=1e-5), "eval-mode mismatch"

        # Training mode: inverted dropout.  Every element must be either 0
        # (dropped) or (x + pe) / (1 - p) (kept); keep rate must be plausible.
        # TODO(synk): dropout RNG stream differs from torch's; semantics match.
        y_train = positional_encoding(x, pe_table, dropout_p=dropout_p,
                                      training=True, rng_key=drop_key)
        scale = 1.0 / (1.0 - dropout_p)
        dropped = jnp.isclose(y_train, 0.0, atol=1e-6)
        kept = jnp.isclose(y_train, ref * scale, rtol=1e-4, atol=1e-5)
        assert bool(jnp.all(dropped | kept)), "training output is not a valid dropout of x+pe"
        keep_frac = 1.0 - float(jnp.mean(dropped.astype(jnp.float32)))
        assert 0.6 <= keep_frac <= 1.0, f"implausible keep fraction {keep_frac}"
        return y_eval, y_train

    # Case 1 (module-default scale): small d_model / batch -> 2-D (S, B*D) layout.
    x1 = jax.random.normal(k1, (8, 2, 32), dtype=jnp.float32)
    pe1 = make_positional_table(max_len, 32)
    outs1 = check(x1, pe1, k2)

    # Case 2: lane-aligned d_model, batch >= sublane pack -> 3-D (tS, B, D) layout.
    x2 = jax.random.normal(k3, (16, 8, 128), dtype=jnp.float32)
    pe2 = make_positional_table(max_len, 128)
    outs2 = check(x2, pe2, k4)

    jax.block_until_ready((outs1, outs2))
    print("KERNEL_OK")
</pallas_src>

<mosaic_0001>
module attributes {stable_mosaic.version = 11 : i64} {
  func.func @_pe_add_kernel(%arg0: i32, %arg1: memref<8x64xf32, #tpu.memory_space<vmem>>, %arg2: memref<8x32xf32, #tpu.memory_space<vmem>>, %arg3: memref<8x64xf32, #tpu.memory_space<vmem>>) attributes {dimension_semantics = [#tpu.dimension_semantics<parallel>], iteration_bounds = array<i64: 1>, scalar_prefetch = 0 : i64, scratch_operands = 0 : i64, tpu.core_type = #tpu.core_type<tc>, window_params = [{transform_indices = @transform_0, window_bounds = array<i64: 8, 64>}, {transform_indices = @transform_1, window_bounds = array<i64: 8, 32>}, {transform_indices = @transform_2, window_bounds = array<i64: 8, 64>}]} {
    %c0 = arith.constant 0 : index
    %c0_0 = arith.constant 0 : index
    %0 = vector.load %arg1[%c0, %c0_0] : memref<8x64xf32, #tpu.memory_space<vmem>>, vector<8x64xf32>
    %c0_1 = arith.constant 0 : index
    %c0_2 = arith.constant 0 : index
    %1 = vector.load %arg2[%c0_1, %c0_2] : memref<8x32xf32, #tpu.memory_space<vmem>>, vector<8x32xf32>
    %2 = tpu.concatenate %1, %1 in 1 : vector<8x32xf32>, vector<8x32xf32> -> vector<8x64xf32>
    %3 = arith.addf %0, %2 : vector<8x64xf32>
    %c0_3 = arith.constant 0 : index
    %c0_4 = arith.constant 0 : index
    %4 = vector.load %arg3[%c0_3, %c0_4] : memref<8x64xf32, #tpu.memory_space<vmem>>, vector<8x64xf32>
    tpu.vector_store %arg3[%c0_3, %c0_4], %3 {strides = array<i32>} : memref<8x64xf32, #tpu.memory_space<vmem>>, vector<8x64xf32>,
    return
  }
  func.func @transform_0(%arg0: i32) -> (i32, i32) {
    %c0_i32 = arith.constant 0 : i32
    %c0_i32_0 = arith.constant 0 : i32
    return %arg0, %c0_i32 : i32, i32
  }
  func.func @transform_1(%arg0: i32) -> (i32, i32) {
    %c0_i32 = arith.constant 0 : i32
    %c0_i32_0 = arith.constant 0 : i32
    return %arg0, %c0_i32 : i32, i32
  }
  func.func @transform_2(%arg0: i32) -> (i32, i32) {
    %c0_i32 = arith.constant 0 : i32
    %c0_i32_0 = arith.constant 0 : i32
    return %arg0, %c0_i32 : i32, i32
  }
}

</mosaic_0001>

<bundles_post_ra>
// kernel: tpu_custom_call.1
= control target key start
LH: loop header
LB: loop body
LE: loop exit
PB: predicated region body
PF: predicated region fallthrough
CT: control target
= control target key end

     0   :  { %7 = vsyncpa [#allocation3], 0  ;;  %s179_s0 = inlined_call_operand.hbm [shape: f32[8,64], index: 0, kind: input, shape index: {}]   ;;  %s180_s1 = inlined_call_operand.hbm [shape: f32[8,32], index: 1, kind: input, shape index: {}]   ;;  %s181_s2 = inlined_call_operand.hbm [shape: f32[8,64], index: 2, kind: output, shape index: {}]  }
   0x1   :  { %8 = vsyncpa [#allocation6], 0 }
   0x2   :  { %9 = vsyncpa [#allocation4], 0  ;;  %s15_s11 = sshll.u32 %s179_s0, 4  ;;  %s151_s12 = smov [#allocation2]   ;;  %s16_s11 = int_to_ptr.hbm [resolvable:$true] %s15_s11 }
   0x3   :  { %s17_s13 = sshll.u32 %s151_s12, 4  ;;  %s26_s16 = sshll.u32 %s180_s1, 4  ;;  %s18_s13 = int_to_ptr.vmem [resolvable:$true] %s17_s13  ;;  %s27_s16 = int_to_ptr.hbm [resolvable:$true] %s26_s16 }
   0x4   :  { %20 = dma.hbm_to_vmem [thread:$0]  %s16_s11, 128, %s18_s13, [#allocation3]  }
   0x5   :  { %s152_s17 = smov [#allocation5]  }
   0x6   :  { %s28_s18 = sshll.u32 %s152_s17, 4  ;;  %s29_s18 = int_to_ptr.vmem [resolvable:$true] %s28_s18 }
   0x7   :  { %31 = dma.hbm_to_vmem [thread:$0]  %s27_s16, 128, %s29_s18, [#allocation6]  }
   0x8   :  { %145 = dma.done.wait [#allocation3], 128  }
   0x9   :  { %146 = vsyncadd [#allocation3], 4294967168 }
   0xa   :  { %147 = dma.done.wait [#allocation6], 128  }
   0xb   :  { %148 = vsyncadd [#allocation6], 4294967168  ;;  %v41_v0 = vld [vmem:[#allocation5] sm:$0xff]  ;;  %s153_s0 = smov 32   ;;  %vm46_vm0 = vcmask 261120   ;;  %v40_v1 = vld [vmem:[#allocation2] sm:$0xff] }
   0xc   :  { %43 = vrot.lane.b32.xlu0 %v41_v0, %s153_s0  ;;  %s154_s19 = smov [#allocation7]   ;;  %s58_s1 = sshll.u32 %s181_s2, 4  ;;  %vm49_vm1 = vcmask 523264   ;;  %s59_s1 = int_to_ptr.hbm [resolvable:$true] %s58_s1 }
   0xd   :  { %s56_s20 = sshll.u32 %s154_s19, 4  ;;  %s57_s20 = int_to_ptr.vmem [resolvable:$true] %s56_s20 }
  0x7e   :  { %v44_v2 = vpop.permute.xlu0 %43 }
  0x7f   :  { %v47_v3 = vsel %vm46_vm0, %v41_v0, %v44_v2 }
  0x80   :  { %v48_v4 = vadd.f32 %v47_v3, %v40_v1 }
  0x82   :  { %50 = vst.msk [vmem:[#allocation7] sm:$0xff] %vm49_vm1, %v48_v4 }
  0x83   :  { %61 = dma.vmem_to_hbm [thread:$0]  %s57_s20, 128, %s59_s1, [#allocation4]  }
  0x84   :  { %149 = dma.done.wait [#allocation4], 128  }
  0x85   :  { %150 = vsyncadd [#allocation4], 4294967168 }
  0x86   :  { %66 = vsyncpa [#allocation3], 1 }
  0x87   :  { %67 = vsyncpa [#allocation6], 1 }
  0x88   :  { %68 = vsyncpa [#allocation4], 1 }

</bundles_post_ra>
